<compile_context>
chip_gen: v7x
topology: tpu7x:2x2x1
jax: 0.10.0
libtpu: 0.0.40
codegen_flags: <defaults>
</compile_context>

<pallas_src>
import functools

import jax
import jax.numpy as jnp
from jax import lax
from jax.experimental import pallas as pl
from jax.experimental.pallas import tpu as pltpu

EPS = 1e-5


# ----------------------------- small helpers --------------------------------

def _round_up(a, b):
    return (a + b - 1) // b * b


def _divisors_desc(n):
    return [d for d in range(n, 0, -1) if n % d == 0]


def _vmem_budget_bytes():
    """Scoped-VMEM budget: ~45% of physical, hard-capped at 48 MiB.

    v7x has only 64 MiB of VMEM per TensorCore (v5e/v6e: 128 MiB), so never
    request the whole thing; leave room for Mosaic scratch + double buffers.
    """
    cap = 64 << 20
    try:
        cap = int(getattr(pltpu.get_tpu_info(), "vmem_capacity_bytes", cap))
    except Exception:
        pass
    return int(min(cap * 9 // 20, 48 << 20))


def _block_vmem_bytes(shape, dtype):
    """Conservative VMEM bytes for one pipeline buffer of `shape` x `dtype`
    (last dim padded to 128 lanes, 2nd-last to the dtype's sublane packing)."""
    itemsize = jnp.dtype(dtype).itemsize
    sub = 8 * max(1, 4 // itemsize)          # 8 (f32) / 16 (bf16) / 32 (int8)
    dims = list(shape)
    dims[-1] = _round_up(dims[-1], 128)
    if len(dims) >= 2:
        dims[-2] = _round_up(dims[-2], sub)
    n = 1
    for d in dims:
        n *= d
    return n * itemsize


def _pick_tile(n, unit, fits, prefer_pack=8):
    """Largest divisor t of n such that t*unit output rows are sublane-aligned
    (or the block covers the full extent) and fits(t) holds; prefers a tiling
    with >= 2 grid steps so both v7x TensorCores get work."""
    ok = lambda t: ((t * unit) % 8 == 0) or (t == n)
    cands = [t for t in _divisors_desc(n) if ok(t) and fits(t)]
    if not cands:
        return None
    pref = [t for t in cands if n // t >= 2 and (t * unit) % prefer_pack == 0]
    if pref:
        return pref[0]
    multi = [t for t in cands if n // t >= 2]
    return multi[0] if multi else cands[0]


# ------------------------------ Pallas kernels -------------------------------

def _patch_rows_kernel(x_ref, w_ref, b_ref, o_ref, *, wo, kh, kwcin, cout_pad):
    """Fused patch-embed tile for the non-overlapping case.

    x_ref: (t, kh, Wo, kw*Cin)   one tile of image rows (all height taps)
    w_ref: (kh, kw*Cin, Cout_p)  BN-scaled conv weights, resident (weight-stationary)
    b_ref: (1, Cout_p)           conv-bias + BN shift (f32)
    o_ref: (t*Wo, Cout_p)
    """
    t = x_ref.shape[0]
    acc = jnp.zeros((t * wo, cout_pad), jnp.float32)
    for dy in range(kh):                       # unrolled: kh is small (8/16)
        xs = x_ref[:, dy, :, :].reshape(t * wo, kwcin)
        acc = acc + jnp.dot(xs, w_ref[dy], preferred_element_type=jnp.float32)
    o_ref[...] = (acc + b_ref[...]).astype(o_ref.dtype)


def _matmul_bias_kernel(p_ref, w_ref, b_ref, o_ref):
    """(tm, K) @ (K, Cout_p) + bias — used by the materialized-patches fallback."""
    acc = jnp.dot(p_ref[...], w_ref[...], preferred_element_type=jnp.float32)
    o_ref[...] = (acc + b_ref[...]).astype(o_ref.dtype)


# ------------------------------ kernel wrappers -------------------------------

def _fused_patch_rows_matmul(x4, w3, b2, *, wo, out_dtype):
    """out[r*Wo+w, c] = sum_dy x4[r, dy, w, :] @ w3[dy, :, c] + b2[0, c]."""
    nho, kh, wo_, kwcin = x4.shape
    assert wo_ == wo
    cout_pad = w3.shape[-1]
    cdtype = x4.dtype
    budget = _vmem_budget_bytes()
    resident = 2 * (_block_vmem_bytes(w3.shape, w3.dtype)
                    + _block_vmem_bytes(b2.shape, b2.dtype))

    def fits(t):
        return (resident
                + 2 * (_block_vmem_bytes((t, kh, wo, kwcin), cdtype)
                       + _block_vmem_bytes((t * wo, cout_pad), out_dtype))
                + (8 << 20)) <= budget

    prefer = 16 if jnp.dtype(cdtype).itemsize < 4 else 8
    t = _pick_tile(nho, wo, fits, prefer_pack=prefer)
    if t is None:
        return None                            # caller falls back to im2col path

    need = (resident
            + 2 * (_block_vmem_bytes((t, kh, wo, kwcin), cdtype)
                   + _block_vmem_bytes((t * wo, cout_pad), out_dtype))
            + (8 << 20))
    vmem_limit = int(max(16 << 20, need))

    m = nho * wo
    cost = pl.CostEstimate(
        flops=2 * m * kh * kwcin * cout_pad,
        transcendentals=0,
        bytes_accessed=(x4.size * x4.dtype.itemsize
                        + w3.size * w3.dtype.itemsize + b2.size * 4
                        + m * cout_pad * jnp.dtype(out_dtype).itemsize))

    kern = functools.partial(_patch_rows_kernel, wo=wo, kh=kh, kwcin=kwcin,
                             cout_pad=cout_pad)
    return pl.pallas_call(
        kern,
        out_shape=jax.ShapeDtypeStruct((m, cout_pad), out_dtype),
        grid=(nho // t,),
        in_specs=[
            pl.BlockSpec((t, kh, wo, kwcin), lambda i: (i, 0, 0, 0)),
            pl.BlockSpec((kh, kwcin, cout_pad), lambda i: (0, 0, 0)),  # stationary
            pl.BlockSpec((1, cout_pad), lambda i: (0, 0)),             # stationary
        ],
        out_specs=pl.BlockSpec((t * wo, cout_pad), lambda i: (i, 0)),
        compiler_params=pltpu.CompilerParams(
            dimension_semantics=("parallel",),
            vmem_limit_bytes=vmem_limit),
        cost_estimate=cost,
    )(x4, w3, b2)


def _tiled_matmul_bias(patches, wmat, b2, *, out_dtype):
    """(M, K) @ (K, Cout_p) + bias; weight-stationary, grid over M row tiles only."""
    m, k = patches.shape
    cout_pad = wmat.shape[-1]
    cdtype = patches.dtype
    budget = _vmem_budget_bytes()
    resident = 2 * (_block_vmem_bytes(wmat.shape, wmat.dtype)
                    + _block_vmem_bytes(b2.shape, b2.dtype))

    def fits(t):
        return (resident
                + 2 * (_block_vmem_bytes((t, k), cdtype)
                       + _block_vmem_bytes((t, cout_pad), out_dtype))
                + (8 << 20)) <= budget

    prefer = 16 if jnp.dtype(cdtype).itemsize < 4 else 8
    tm = _pick_tile(m, 1, fits, prefer_pack=prefer)
    m_pad = m
    if tm is None:                             # no clean divisor fits: pad M
        tm = 256
        while tm > 8 and not fits(tm):
            tm //= 2
        m_pad = _round_up(m, tm)
        patches = jnp.pad(patches, ((0, m_pad - m), (0, 0)))

    need = (resident
            + 2 * (_block_vmem_bytes((tm, k), cdtype)
                   + _block_vmem_bytes((tm, cout_pad), out_dtype))
            + (8 << 20))
    vmem_limit = int(max(16 << 20, need))

    cost = pl.CostEstimate(
        flops=2 * m_pad * k * cout_pad,
        transcendentals=0,
        bytes_accessed=(patches.size * patches.dtype.itemsize
                        + wmat.size * wmat.dtype.itemsize + b2.size * 4
                        + m_pad * cout_pad * jnp.dtype(out_dtype).itemsize))

    out = pl.pallas_call(
        _matmul_bias_kernel,
        out_shape=jax.ShapeDtypeStruct((m_pad, cout_pad), out_dtype),
        grid=(m_pad // tm,),
        in_specs=[
            pl.BlockSpec((tm, k), lambda i: (i, 0)),
            pl.BlockSpec((k, cout_pad), lambda i: (0, 0)),   # weight-stationary
            pl.BlockSpec((1, cout_pad), lambda i: (0, 0)),   # stationary bias
        ],
        out_specs=pl.BlockSpec((tm, cout_pad), lambda i: (i, 0)),
        compiler_params=pltpu.CompilerParams(
            dimension_semantics=("parallel",),
            vmem_limit_bytes=vmem_limit),
        cost_estimate=cost,
    )(patches, wmat, b2)
    return out if m_pad == m else out[:m]


# ------------------------------ glue (overlap) --------------------------------

def _im2col(xp, kh, kw, stride, ho, wo):
    """(N, Hp, Wp, Cin) -> (N*Ho*Wo, kh*kw*Cin), (kh, kw, Cin) innermost."""
    n, _, _, cin = xp.shape
    cols = []
    for dy in range(kh):
        for dx in range(kw):
            cols.append(xp[:, dy:dy + stride * ho:stride,
                           dx:dx + stride * wo:stride, :])
    stacked = jnp.stack(cols, axis=3)          # (N, Ho, Wo, kh*kw, Cin)
    return stacked.reshape(n * ho * wo, kh * kw * cin)


# --------------------------- PatchEmbedOverlapping ----------------------------

def init_params(key, *, in_chans=3, embed_dim=128, patch_size=8):
    ks = jax.random.split(key, 6)
    fan_in = in_chans * patch_size * patch_size
    w = (jax.random.normal(ks[0], (embed_dim, in_chans, patch_size, patch_size),
                           jnp.float32) / jnp.sqrt(float(fan_in)))
    b = 0.1 * jax.random.normal(ks[1], (embed_dim,), jnp.float32)
    gamma = 1.0 + 0.1 * jax.random.normal(ks[2], (embed_dim,), jnp.float32)
    beta = 0.1 * jax.random.normal(ks[3], (embed_dim,), jnp.float32)
    mean = 0.05 * jax.random.normal(ks[4], (embed_dim,), jnp.float32)
    var = jnp.abs(1.0 + 0.1 * jax.random.normal(ks[5], (embed_dim,), jnp.float32))
    return {"proj_w": w, "proj_b": b, "bn": (gamma, beta, mean, var)}


@functools.partial(jax.jit, static_argnames=("patch_size", "stride", "padding",
                                              "compute_dtype", "output_format"))
def patch_embed_forward(x_nchw, params, *, patch_size, stride, padding,
                        compute_dtype=jnp.bfloat16, output_format="NCHW"):
    """x = BatchNorm2d(Conv2d(x, kernel=patch, stride, padding)) — eval-mode BN.

    NCHW in / NCHW out (PyTorch semantics). Pass output_format="NHWC" to skip
    the final layout transpose when the consumer can take channels-last.
    """
    w = params["proj_w"]                       # (embed_dim, in_chans, kh, kw)
    conv_b = params["proj_b"]
    gamma, beta, mean, var = params["bn"]
    cout, cin, kh, kw = w.shape
    assert kh == patch_size and kw == patch_size
    # TODO(synk): groups != 1 grouped conv and training-mode BN are not supported.

    n, cin_x, h, w_in = x_nchw.shape
    assert cin_x == cin
    out_dtype = x_nchw.dtype

    s = gamma / jnp.sqrt(var + EPS)            # fold eval-mode BN into the matmul
    bias = conv_b * s + (beta - mean * s)
    cout_pad = _round_up(cout, 128)            # lane-dense output blocks
    b2 = jnp.pad(bias.reshape(1, cout).astype(jnp.float32),
                 ((0, 0), (0, cout_pad - cout)))

    # NCHW -> NHWC (+ optional zero pad) fused with the compute-dtype cast:
    # a single XLA pass over the activation.  The patch/tap relayout itself
    # happens in VMEM inside the kernel.
    x = jnp.transpose(x_nchw, (0, 2, 3, 1))
    if padding:
        x = jnp.pad(x, ((0, 0), (padding, padding), (padding, padding), (0, 0)))
    hp, wp = h + 2 * padding, w_in + 2 * padding
    ho = (hp - kh) // stride + 1
    wo = (wp - kw) // stride + 1

    out2d = None
    if stride == kh and stride == kw:
        # Non-overlapping (default patch embed): zero-copy view + in-kernel taps.
        xc = x if (ho * kh == hp and wo * kw == wp) else x[:, :ho * kh, :wo * kw, :]
        x4 = xc.reshape(n * ho, kh, wo, kw * cin).astype(compute_dtype)
        w3 = (jnp.transpose(w, (2, 3, 1, 0)).reshape(kh, kw * cin, cout)
              * s[None, None, :])
        w3 = jnp.pad(w3, ((0, 0), (0, 0), (0, cout_pad - cout))).astype(compute_dtype)
        out2d = _fused_patch_rows_matmul(x4, w3, b2, wo=wo, out_dtype=out_dtype)

    if out2d is None:
        # TODO(synk): overlapping strides still materialize im2col patches in HBM
        # (≈ kh*kw/stride^2 duplication) before the weight-stationary matmul.
        patches = _im2col(x, kh, kw, stride, ho, wo).astype(compute_dtype)
        wmat = (jnp.transpose(w, (2, 3, 1, 0)).reshape(kh * kw * cin, cout)
                * s[None, :])
        wmat = jnp.pad(wmat, ((0, 0), (0, cout_pad - cout))).astype(compute_dtype)
        out2d = _tiled_matmul_bias(patches, wmat, b2, out_dtype=out_dtype)

    if cout_pad != cout:
        out2d = out2d[:, :cout]
    out_nhwc = out2d.reshape(n, ho, wo, cout)
    if output_format == "NHWC":
        return out_nhwc
    return jnp.transpose(out_nhwc, (0, 3, 1, 2))          # module spec: NCHW


# ------------------------------ pure-JAX reference ----------------------------

def reference_forward(x_nchw, params, *, stride, padding):
    w = params["proj_w"]
    b = params["proj_b"]
    gamma, beta, mean, var = params["bn"]
    y = lax.conv_general_dilated(
        x_nchw, w, (stride, stride), ((padding, padding), (padding, padding)),
        dimension_numbers=("NCHW", "OIHW", "NCHW"))
    y = y + b[None, :, None, None]
    s = gamma / jnp.sqrt(var + EPS)
    return y * s[None, :, None, None] + (beta - mean * s)[None, :, None, None]


# ----------------------------------- main -------------------------------------

if __name__ == "__main__":
    key = jax.random.PRNGKey(0)
    kx, kp1, kp2 = jax.random.split(key, 3)

    x = jax.random.normal(kx, (2, 3, 32, 32), dtype=jnp.float32)   # NCHW

    # Config 1: default non-overlapping patch embed (stride == patch, padding 0).
    p1 = init_params(kp1, in_chans=3, embed_dim=128, patch_size=8)
    ref1 = jax.block_until_ready(reference_forward(x, p1, stride=8, padding=0))

    out1_f32 = jax.block_until_ready(
        patch_embed_forward(x, p1, patch_size=8, stride=8, padding=0,
                            compute_dtype=jnp.float32))
    assert out1_f32.shape == (2, 128, 4, 4), out1_f32.shape
    assert jnp.allclose(out1_f32, ref1, rtol=1e-3, atol=1e-3), "f32 mismatch (cfg1)"

    out1_bf16 = jax.block_until_ready(
        patch_embed_forward(x, p1, patch_size=8, stride=8, padding=0))  # bf16 default
    assert out1_bf16.shape == (2, 128, 4, 4), out1_bf16.shape
    assert jnp.allclose(out1_bf16, ref1, rtol=5e-2, atol=8e-2), "bf16 mismatch (cfg1)"

    # Config 2: overlapping patches (patch 7, stride 4, padding 2) -> fallback path.
    p2 = init_params(kp2, in_chans=3, embed_dim=128, patch_size=7)
    ref2 = jax.block_until_ready(reference_forward(x, p2, stride=4, padding=2))

    out2_f32 = jax.block_until_ready(
        patch_embed_forward(x, p2, patch_size=7, stride=4, padding=2,
                            compute_dtype=jnp.float32))
    assert out2_f32.shape == (2, 128, 8, 8), out2_f32.shape
    assert jnp.allclose(out2_f32, ref2, rtol=1e-3, atol=1e-3), "f32 mismatch (cfg2)"

    print("KERNEL_OK")
</pallas_src>

<mosaic_0001>
module attributes {stable_mosaic.version = 11 : i64} {
  func.func @_patch_rows_kernel(%arg0: i32, %arg1: memref<4x8x4x24xf32, #tpu.memory_space<vmem>>, %arg2: memref<8x24x128xf32, #tpu.memory_space<vmem>>, %arg3: memref<1x128xf32, #tpu.memory_space<vmem>>, %arg4: memref<16x128xf32, #tpu.memory_space<vmem>>) attributes {dimension_semantics = [#tpu.dimension_semantics<parallel>], iteration_bounds = array<i64: 2>, scalar_prefetch = 0 : i64, scratch_operands = 0 : i64, tpu.core_type = #tpu.core_type<tc>, window_params = [{transform_indices = @transform_0, window_bounds = array<i64: 4, 8, 4, 24>}, {pipeline_mode = #tpu.pipeline_mode<synchronous>, transform_indices = @transform_1, window_bounds = array<i64: 8, 24, 128>}, {pipeline_mode = #tpu.pipeline_mode<synchronous>, transform_indices = @transform_2, window_bounds = array<i64: 1, 128>}, {transform_indices = @transform_3, window_bounds = array<i64: 16, 128>}]} {
    %cst = arith.constant 0.000000e+00 : f32
    %0 = vector.broadcast %cst : f32 to vector<16x128xf32>
    %c0 = arith.constant 0 : index
    %c0_0 = arith.constant 0 : index
    %c0_1 = arith.constant 0 : index
    %c0_2 = arith.constant 0 : index
    %1 = vector.load %arg1[%c0, %c0_0, %c0_1, %c0_2] : memref<4x8x4x24xf32, #tpu.memory_space<vmem>>, vector<4x1x4x24xf32>
    %2 = vector.shape_cast %1 : vector<4x1x4x24xf32> to vector<4x4x24xf32>
    %3 = vector.shape_cast %2 : vector<4x4x24xf32> to vector<16x24xf32>
    %c0_3 = arith.constant 0 : index
    %c0_4 = arith.constant 0 : index
    %c0_5 = arith.constant 0 : index
    %4 = vector.load %arg2[%c0_3, %c0_4, %c0_5] : memref<8x24x128xf32, #tpu.memory_space<vmem>>, vector<1x24x128xf32>
    %5 = vector.shape_cast %4 : vector<1x24x128xf32> to vector<24x128xf32>
    %cst_6 = arith.constant dense<0.000000e+00> : vector<16x128xf32>
    %6 = tpu.matmul %3, %5, %cst_6 {dimension_numbers = #tpu.dot_dimension_numbers<[1], [0], [0], [1], [0, 0, 1, 1], [], []>} : vector<16x24xf32>, vector<24x128xf32>, vector<16x128xf32> -> vector<16x128xf32>
    %7 = arith.addf %0, %6 : vector<16x128xf32>
    %c0_7 = arith.constant 0 : index
    %c1 = arith.constant 1 : index
    %c0_8 = arith.constant 0 : index
    %c0_9 = arith.constant 0 : index
    %8 = vector.load %arg1[%c0_7, %c1, %c0_8, %c0_9] : memref<4x8x4x24xf32, #tpu.memory_space<vmem>>, vector<4x1x4x24xf32>
    %9 = vector.shape_cast %8 : vector<4x1x4x24xf32> to vector<4x4x24xf32>
    %10 = vector.shape_cast %9 : vector<4x4x24xf32> to vector<16x24xf32>
    %c1_10 = arith.constant 1 : index
    %c0_11 = arith.constant 0 : index
    %c0_12 = arith.constant 0 : index
    %11 = vector.load %arg2[%c1_10, %c0_11, %c0_12] : memref<8x24x128xf32, #tpu.memory_space<vmem>>, vector<1x24x128xf32>
    %12 = vector.shape_cast %11 : vector<1x24x128xf32> to vector<24x128xf32>
    %cst_13 = arith.constant dense<0.000000e+00> : vector<16x128xf32>
    %13 = tpu.matmul %10, %12, %cst_13 {dimension_numbers = #tpu.dot_dimension_numbers<[1], [0], [0], [1], [0, 0, 1, 1], [], []>} : vector<16x24xf32>, vector<24x128xf32>, vector<16x128xf32> -> vector<16x128xf32>
    %14 = arith.addf %7, %13 : vector<16x128xf32>
    %c0_14 = arith.constant 0 : index
    %c2 = arith.constant 2 : index
    %c0_15 = arith.constant 0 : index
    %c0_16 = arith.constant 0 : index
    %15 = vector.load %arg1[%c0_14, %c2, %c0_15, %c0_16] : memref<4x8x4x24xf32, #tpu.memory_space<vmem>>, vector<4x1x4x24xf32>
    %16 = vector.shape_cast %15 : vector<4x1x4x24xf32> to vector<4x4x24xf32>
    %17 = vector.shape_cast %16 : vector<4x4x24xf32> to vector<16x24xf32>
    %c2_17 = arith.constant 2 : index
    %c0_18 = arith.constant 0 : index
    %c0_19 = arith.constant 0 : index
    %18 = vector.load %arg2[%c2_17, %c0_18, %c0_19] : memref<8x24x128xf32, #tpu.memory_space<vmem>>, vector<1x24x128xf32>
    %19 = vector.shape_cast %18 : vector<1x24x128xf32> to vector<24x128xf32>
    %cst_20 = arith.constant dense<0.000000e+00> : vector<16x128xf32>
    %20 = tpu.matmul %17, %19, %cst_20 {dimension_numbers = #tpu.dot_dimension_numbers<[1], [0], [0], [1], [0, 0, 1, 1], [], []>} : vector<16x24xf32>, vector<24x128xf32>, vector<16x128xf32> -> vector<16x128xf32>
    %21 = arith.addf %14, %20 : vector<16x128xf32>
    %c0_21 = arith.constant 0 : index
    %c3 = arith.constant 3 : index
    %c0_22 = arith.constant 0 : index
    %c0_23 = arith.constant 0 : index
    %22 = vector.load %arg1[%c0_21, %c3, %c0_22, %c0_23] : memref<4x8x4x24xf32, #tpu.memory_space<vmem>>, vector<4x1x4x24xf32>
    %23 = vector.shape_cast %22 : vector<4x1x4x24xf32> to vector<4x4x24xf32>
    %24 = vector.shape_cast %23 : vector<4x4x24xf32> to vector<16x24xf32>
    %c3_24 = arith.constant 3 : index
    %c0_25 = arith.constant 0 : index
    %c0_26 = arith.constant 0 : index
    %25 = vector.load %arg2[%c3_24, %c0_25, %c0_26] : memref<8x24x128xf32, #tpu.memory_space<vmem>>, vector<1x24x128xf32>
    %26 = vector.shape_cast %25 : vector<1x24x128xf32> to vector<24x128xf32>
    %cst_27 = arith.constant dense<0.000000e+00> : vector<16x128xf32>
    %27 = tpu.matmul %24, %26, %cst_27 {dimension_numbers = #tpu.dot_dimension_numbers<[1], [0], [0], [1], [0, 0, 1, 1], [], []>} : vector<16x24xf32>, vector<24x128xf32>, vector<16x128xf32> -> vector<16x128xf32>
    %28 = arith.addf %21, %27 : vector<16x128xf32>
    %c0_28 = arith.constant 0 : index
    %c4 = arith.constant 4 : index
    %c0_29 = arith.constant 0 : index
    %c0_30 = arith.constant 0 : index
    %29 = vector.load %arg1[%c0_28, %c4, %c0_29, %c0_30] : memref<4x8x4x24xf32, #tpu.memory_space<vmem>>, vector<4x1x4x24xf32>
    %30 = vector.shape_cast %29 : vector<4x1x4x24xf32> to vector<4x4x24xf32>
    %31 = vector.shape_cast %30 : vector<4x4x24xf32> to vector<16x24xf32>
    %c4_31 = arith.constant 4 : index
    %c0_32 = arith.constant 0 : index
    %c0_33 = arith.constant 0 : index
    %32 = vector.load %arg2[%c4_31, %c0_32, %c0_33] : memref<8x24x128xf32, #tpu.memory_space<vmem>>, vector<1x24x128xf32>
    %33 = vector.shape_cast %32 : vector<1x24x128xf32> to vector<24x128xf32>
    %cst_34 = arith.constant dense<0.000000e+00> : vector<16x128xf32>
    %34 = tpu.matmul %31, %33, %cst_34 {dimension_numbers = #tpu.dot_dimension_numbers<[1], [0], [0], [1], [0, 0, 1, 1], [], []>} : vector<16x24xf32>, vector<24x128xf32>, vector<16x128xf32> -> vector<16x128xf32>
    %35 = arith.addf %28, %34 : vector<16x128xf32>
    %c0_35 = arith.constant 0 : index
    %c5 = arith.constant 5 : index
    %c0_36 = arith.constant 0 : index
    %c0_37 = arith.constant 0 : index
    %36 = vector.load %arg1[%c0_35, %c5, %c0_36, %c0_37] : memref<4x8x4x24xf32, #tpu.memory_space<vmem>>, vector<4x1x4x24xf32>
    %37 = vector.shape_cast %36 : vector<4x1x4x24xf32> to vector<4x4x24xf32>
    %38 = vector.shape_cast %37 : vector<4x4x24xf32> to vector<16x24xf32>
    %c5_38 = arith.constant 5 : index
    %c0_39 = arith.constant 0 : index
    %c0_40 = arith.constant 0 : index
    %39 = vector.load %arg2[%c5_38, %c0_39, %c0_40] : memref<8x24x128xf32, #tpu.memory_space<vmem>>, vector<1x24x128xf32>
    %40 = vector.shape_cast %39 : vector<1x24x128xf32> to vector<24x128xf32>
    %cst_41 = arith.constant dense<0.000000e+00> : vector<16x128xf32>
    %41 = tpu.matmul %38, %40, %cst_41 {dimension_numbers = #tpu.dot_dimension_numbers<[1], [0], [0], [1], [0, 0, 1, 1], [], []>} : vector<16x24xf32>, vector<24x128xf32>, vector<16x128xf32> -> vector<16x128xf32>
    %42 = arith.addf %35, %41 : vector<16x128xf32>
    %c0_42 = arith.constant 0 : index
    %c6 = arith.constant 6 : index
    %c0_43 = arith.constant 0 : index
    %c0_44 = arith.constant 0 : index
    %43 = vector.load %arg1[%c0_42, %c6, %c0_43, %c0_44] : memref<4x8x4x24xf32, #tpu.memory_space<vmem>>, vector<4x1x4x24xf32>
    %44 = vector.shape_cast %43 : vector<4x1x4x24xf32> to vector<4x4x24xf32>
    %45 = vector.shape_cast %44 : vector<4x4x24xf32> to vector<16x24xf32>
    %c6_45 = arith.constant 6 : index
    %c0_46 = arith.constant 0 : index
    %c0_47 = arith.constant 0 : index
    %46 = vector.load %arg2[%c6_45, %c0_46, %c0_47] : memref<8x24x128xf32, #tpu.memory_space<vmem>>, vector<1x24x128xf32>
    %47 = vector.shape_cast %46 : vector<1x24x128xf32> to vector<24x128xf32>
    %cst_48 = arith.constant dense<0.000000e+00> : vector<16x128xf32>
    %48 = tpu.matmul %45, %47, %cst_48 {dimension_numbers = #tpu.dot_dimension_numbers<[1], [0], [0], [1], [0, 0, 1, 1], [], []>} : vector<16x24xf32>, vector<24x128xf32>, vector<16x128xf32> -> vector<16x128xf32>
    %49 = arith.addf %42, %48 : vector<16x128xf32>
    %c0_49 = arith.constant 0 : index
    %c7 = arith.constant 7 : index
    %c0_50 = arith.constant 0 : index
    %c0_51 = arith.constant 0 : index
    %50 = vector.load %arg1[%c0_49, %c7, %c0_50, %c0_51] : memref<4x8x4x24xf32, #tpu.memory_space<vmem>>, vector<4x1x4x24xf32>
    %51 = vector.shape_cast %50 : vector<4x1x4x24xf32> to vector<4x4x24xf32>
    %52 = vector.shape_cast %51 : vector<4x4x24xf32> to vector<16x24xf32>
    %c7_52 = arith.constant 7 : index
    %c0_53 = arith.constant 0 : index
    %c0_54 = arith.constant 0 : index
    %53 = vector.load %arg2[%c7_52, %c0_53, %c0_54] : memref<8x24x128xf32, #tpu.memory_space<vmem>>, vector<1x24x128xf32>
    %54 = vector.shape_cast %53 : vector<1x24x128xf32> to vector<24x128xf32>
    %cst_55 = arith.constant dense<0.000000e+00> : vector<16x128xf32>
    %55 = tpu.matmul %52, %54, %cst_55 {dimension_numbers = #tpu.dot_dimension_numbers<[1], [0], [0], [1], [0, 0, 1, 1], [], []>} : vector<16x24xf32>, vector<24x128xf32>, vector<16x128xf32> -> vector<16x128xf32>
    %56 = arith.addf %49, %55 : vector<16x128xf32>
    %c0_56 = arith.constant 0 : index
    %c0_57 = arith.constant 0 : index
    %57 = vector.load %arg3[%c0_56, %c0_57] : memref<1x128xf32, #tpu.memory_space<vmem>>, vector<1x128xf32>
    %58 = vector.broadcast %57 : vector<1x128xf32> to vector<16x128xf32>
    %59 = arith.addf %56, %58 : vector<16x128xf32>
    %c0_58 = arith.constant 0 : index
    %c0_59 = arith.constant 0 : index
    %60 = vector.load %arg4[%c0_58, %c0_59] : memref<16x128xf32, #tpu.memory_space<vmem>>, vector<16x128xf32>
    tpu.vector_store %arg4[%c0_58, %c0_59], %59 {strides = array<i32>} : memref<16x128xf32, #tpu.memory_space<vmem>>, vector<16x128xf32>,
    return
  }
  func.func @transform_0(%arg0: i32) -> (i32, i32, i32, i32) {
    %c0_i32 = arith.constant 0 : i32
    %c0_i32_0 = arith.constant 0 : i32
    %c0_i32_1 = arith.constant 0 : i32
    %c0_i32_2 = arith.constant 0 : i32
    return %arg0, %c0_i32, %c0_i32_0, %c0_i32_1 : i32, i32, i32, i32
  }
  func.func @transform_1(%arg0: i32) -> (i32, i32, i32) {
    %c0_i32 = arith.constant 0 : i32
    %c0_i32_0 = arith.constant 0 : i32
    %c0_i32_1 = arith.constant 0 : i32
    %c0_i32_2 = arith.constant 0 : i32
    return %c0_i32, %c0_i32_0, %c0_i32_1 : i32, i32, i32
  }
  func.func @transform_2(%arg0: i32) -> (i32, i32) {
    %c0_i32 = arith.constant 0 : i32
    %c0_i32_0 = arith.constant 0 : i32
    %c0_i32_1 = arith.constant 0 : i32
    return %c0_i32, %c0_i32_0 : i32, i32
  }
  func.func @transform_3(%arg0: i32) -> (i32, i32) {
    %c0_i32 = arith.constant 0 : i32
    %c0_i32_0 = arith.constant 0 : i32
    return %arg0, %c0_i32 : i32, i32
  }
}

</mosaic_0001>

<bundles_post_ra>
// kernel: patch_embed_forward.1
= control target key start
LH: loop header
LB: loop body
LE: loop exit
PB: predicated region body
PF: predicated region fallthrough
CT: control target
= control target key end

     0   :  { %8 = vsyncpa [#allocation3], 0  ;;  %s1619_s0 = inlined_call_operand.vmem [shape: f32[8,8,4,24], index: 0, kind: input, shape index: {}]   ;;  %s1620_s1 = inlined_call_operand.vmem [shape: f32[8,24,128], index: 1, kind: input, shape index: {}]   ;;  %s1621_s2 = inlined_call_operand.vmem [shape: f32[1,128], index: 2, kind: input, shape index: {}]   ;;  %s1622_s3 = inlined_call_operand.hbm [shape: f32[32,128], index: 3, kind: output, shape index: {}]  }
   0x1   :  { %10 = vsyncpa [#allocation3 + $0x1], 0  ;;  %s1392_s12 = smov 0   ;;  %s1394_s13 = smov 0  }
   0x2   :  { %s1396_s14 = smov 0   ;;  %s1398_s15 = smov 0  }
   0x3 LB: > { %s1413_s16 = sadd.s32 4294967295, %s1367_s15   ;;  %s1025_s17 = sadd.s32 4294967294, %s1367_s15   ;;  %s1367_s15 = sphi %s1398_s15, %s1628_s15   ;;  %s1363_s14 = sphi %s1396_s14, %s1627_s14   ;;  %s1359_s13 = sphi %s1394_s13, %s1626_s13   ;;  %s1355_s12 = sphi %s1392_s12, %s1625_s12  }
   0x4   : > { %s1417_s18 = sadd.s32 1, %s1367_s15   ;;  %s91_s19 = sadd.s32 1, %s1363_s14 }
   0x5   : > { %s88_s20 = ssub.s32 %s1367_s15, %s1417_s18  ;;  %p101_p0 = scmp.ne.s32.totalorder %s1363_s14, %s1359_s13 }
   0x6   : > { %p89_p1 = scmp.eq.s32.totalorder %s88_s20, 0  ;;  %p102_p2 = scmp.eq.s32.totalorder %s1413_s16, 1 }
   0x7   : > { %p107_p3 = scmp.ne.s32.totalorder %s1359_s13, %s1355_s12  ;;  %p108_p4 = scmp.eq.s32.totalorder %s1025_s17, 1 }
   0x8   : > { %s1428_s21 = scalar_select %p89_p1, %s1363_s14, %s91_s19  }
   0x9   : > { %p1430_p5 = por %p102_p2, %p101_p0  ;;  %p1434_p6 = por %p108_p4, %p107_p3 }
   0xa   : > { %p1028_p7 = scmp.ge.s32.totalorder %s1367_s15, 1  ;;  %p142_p8 = scmp.lt.s32.totalorder %s1367_s15, 3 }
   0xc   : > { %p143_p9 = pnand %p1028_p7, %p142_p8 }
   0xd   : > { %v1037_v0 = vld [vmem:[%s1620_s1 + $0x18] sm:$0xff] (!%p143_p9)  ;;  %v1038_v1 = vld [vmem:[%s1620_s1 + $0x20] sm:$0xff] (!%p143_p9)  ;;  %s1030_s30 = sshll.u32 (!%p143_p9), %s1413_s16, 2  ;;  %v1067_v4 = vld [vmem:[%s1620_s1 + $0x68] sm:$0xff] (!%p143_p9)  ;;  %vm197_vm0 = vcmask (!%p143_p9), 195584   ;;  %s164_s24 = sand.u32 (!%p143_p9), 1, %s1359_s13  }
   0xe   : > { %146 = sbr.rel (%p143_p9) target bundleno = 286 (0x11e), region = 32  ;;  %v1066_v2 = vld [vmem:[%s1620_s1 + $0x60] sm:$0xff] (!%p143_p9)  ;;  %v1218_v3 = vpack.c.bf16 (!%p143_p9), %v1038_v1, %v1037_v0  ;;  %p168_p10 = scmp.lt.s32.totalorder (!%p143_p9), %s1030_s30, 7  ;;  %v1039_v6 = vld [vmem:[%s1620_s1 + $0x28] sm:$0xff] (!%p143_p9)  ;;  %v1068_v9 = vld [vmem:[%s1620_s1 + $0x70] sm:$0xff] (!%p143_p9) }
   0xf   : > { %v1234_v5 = vpack.c.bf16 (!%p143_p9), %v1067_v4, %v1066_v2  ;;  %v179_v7 = vld [vmem:[%s1620_s1] sm:$0xff] (!%p143_p9)  ;;  %v180_v8 = vld [vmem:[%s1620_s1 + $0x8] sm:$0xff] (!%p143_p9)  ;;  %v1075_v10 = vld [vmem:[%s1620_s1 + $0x78] sm:$0xff] (!%p143_p9)  ;;  %s1029_s25 = sshll.u32 (!%p143_p9), %s164_s24, 4  ;;  %s1105_s29 = sshll.u32 (!%p143_p9), %s1413_s16, 8 }
  0x10   : > { %1219 = vmatprep.subr.bf16.mxu1 (!%p143_p9), %v1218_v3  ;;  %v1076_v11 = vld [vmem:[%s1620_s1 + $0x80] sm:$0xff] (!%p143_p9)  ;;  %v1222_v12 = vpack.c.bf16 (!%p143_p9), %v180_v8, %v179_v7  ;;  %v181_v21 = vld [vmem:[%s1620_s1 + $0x10] sm:$0xff] (!%p143_p9)  ;;  %v1049_v23 = vld [vmem:[%s1620_s1 + $0x38] sm:$0xff] (!%p143_p9)  ;;  %s1576_s6 = scalar_lea.hbm (!%p143_p9), %s1622_s3, %s1105_s29  ;;  %s1578_s7 = scalar_lea.sflag (!%p143_p9), [#allocation3], %s164_s24 }
  0x11   : > { %1235 = vmatprep.subr.bf16.mxu0 (!%p143_p9), %v1234_v5  ;;  %1221 = vmatpush3.bf16.msra.mxu1 (!%p143_p9), %v1218_v3  ;;  %v1238_v13 = vpack.c.bf16 (!%p143_p9), %v1076_v11, %v1075_v10  ;;  %v1048_v22 = vld [vmem:[%s1620_s1 + $0x30] sm:$0xff] (!%p143_p9)  ;;  %v1077_v33 = vld [vmem:[%s1620_s1 + $0x88] sm:$0xff] (!%p143_p9)  ;;  %v1085_v37 = vld [vmem:[%s1620_s1 + $0x98] sm:$0xff] (!%p143_p9)  ;;  %s1369_s8 = smov (!%p143_p9), [#allocation2]  }
  0x12   : > { %1237 = vmatpush3.bf16.msra.mxu0 (!%p143_p9), %v1234_v5  ;;  %1150 = vmatprep.subr.mxu1 (!%p143_p9), %v1039_v6  ;;  %v1084_v36 = vld [vmem:[%s1620_s1 + $0x90] sm:$0xff] (!%p143_p9)  ;;  %v1226_v40 = vpack.c.bf16 (!%p143_p9), %v1049_v23, %v1048_v22  ;;  %v1050_v50 = vld [vmem:[%s1620_s1 + $0x40] sm:$0xff] (!%p143_p9)  ;;  %v1057_v52 = vld [vmem:[%s1620_s1 + $0x48] sm:$0xff] (!%p143_p9)  ;;  %s1309_s9 = sshll.u32 (!%p143_p9), %s1369_s8, 4  ;;  %s1310_s9 = int_to_ptr.vmem [resolvable:$false] %s1309_s9 }
  0x13   : > { %1186 = vmatprep.subr.mxu0 (!%p143_p9), %v1068_v9  ;;  %v1242_v43 = vpack.c.bf16 (!%p143_p9), %v1085_v37, %v1084_v36  ;;  %v1058_v53 = vld [vmem:[%s1620_s1 + $0x50] sm:$0xff] (!%p143_p9)  ;;  %v1086_v54 = vld [vmem:[%s1620_s1 + $0xa0] sm:$0xff] (!%p143_p9)  ;;  %v1093_v56 = vld [vmem:[%s1620_s1 + $0xa8] sm:$0xff] (!%p143_p9)  ;;  %s1311_s10 = scalar_lea.vmem (!%p143_p9), %s1310_s9, 512 }
  0x14   : > { %v1094_v57 = vld [vmem:[%s1620_s1 + $0xb0] sm:$0xff] (!%p143_p9)  ;;  %v1230_v60 = vpack.c.bf16 (!%p143_p9), %v1058_v53, %v1057_v52  ;;  %v1095_v8 = vld [vmem:[%s1620_s1 + $0xb8] sm:$0xff] (!%p143_p9) }
  0x15   : > { %s1630_s30 = smov (!%p168_p10, %s1030_s30), 7  ;;  %1151 = vmatpush3.msra.mxu1 %v1039_v6  ;;  %v1246_v63 = vpack.c.bf16 %v1094_v57, %v1093_v56  ;;  %v1059_v6 = vld [vmem:[%s1620_s1 + $0x58] sm:$0xff] }
  0x16   : > { %s1104_s27 = sshll.u32 %s1630_s30, 5  ;;  %1187 = vmatpush3.msra.mxu0 %v1068_v9  ;;  %1223 = vmatprep.subr.bf16.mxu1 %v1222_v12 }
  0x17   : > { %s1474_s4 = scalar_lea.vmem %s1619_s0, %s1104_s27  ;;  %1239 = vmatprep.subr.bf16.mxu0 %v1238_v13  ;;  %s166_s27 = scalar_lea.vmem [#allocation2], %s1029_s25 }
  0x18   : > { %v1033_v14 = vld [vmem:[%s1474_s4 + $0x4] sm:$0xf]  ;;  %v1062_v16 = vld [vmem:[%s1474_s4 + $0x10] sm:$0xf]  ;;  %v175_v28 = vld [vmem:[%s1474_s4] sm:$0xf] }
  0x19   : > { %v1034_v15 = vld [vmem:[%s1474_s4 + $0x24] sm:$0xf]  ;;  %v1063_v18 = vld [vmem:[%s1474_s4 + $0x30] sm:$0xf]  ;;  %v176_v30 = vld [vmem:[%s1474_s4 + $0x20] sm:$0xf] }
  0x1a   : > { %v195_v17 = vcombine.low %v1033_v14, %v1034_v15  ;;  %v1035_v19 = vld [vmem:[%s1474_s4 + $0x44] sm:$0xf]  ;;  %v567_v24 = vcombine.low %v1062_v16, %v1063_v18  ;;  %v1064_v26 = vld [vmem:[%s1474_s4 + $0x50] sm:$0xf]  ;;  %v1071_v31 = vld [vmem:[%s1474_s4 + $0x14] sm:$0xf]  ;;  %v281_v34 = vcombine.low %v175_v28, %v176_v30 }
  0x1b   : > { %v1036_v20 = vld [vmem:[%s1474_s4 + $0x64] sm:$0xf]  ;;  %v1065_v27 = vld [vmem:[%s1474_s4 + $0x70] sm:$0xf]  ;;  %v1072_v32 = vld [vmem:[%s1474_s4 + $0x34] sm:$0xf] }
  0x1c   : > { %v196_v25 = vcombine.low %v1035_v19, %v1036_v20  ;;  %1152 = vmatprep.mubr.msk.f32.mxu1 %vm197_vm0, %v195_v17  ;;  %v568_v29 = vcombine.low %v1064_v26, %v1065_v27  ;;  %1188 = vmatprep.mubr.msk.f32.mxu0 %vm197_vm0, %v567_v24  ;;  %v663_v35 = vcombine.low %v1071_v31, %v1072_v32  ;;  %v177_v38 = vld [vmem:[%s1474_s4 + $0x40] sm:$0xf]  ;;  %v1073_v41 = vld [vmem:[%s1474_s4 + $0x54] sm:$0xf]  ;;  %v1044_v45 = vld [vmem:[%s1474_s4 + $0x8] sm:$0xf] }
  0x1d   : > { %v178_v39 = vld [vmem:[%s1474_s4 + $0x60] sm:$0xf]  ;;  %v1074_v42 = vld [vmem:[%s1474_s4 + $0x74] sm:$0xf]  ;;  %v1045_v46 = vld [vmem:[%s1474_s4 + $0x28] sm:$0xf] }
  0x1e   : > { %1153 = vmatmul.mubr.msk.f32.vlgmr.msra.gmra.mrb[0].mxu1 %vm197_vm0, %v196_v25  ;;  %1189 = vmatmul.mubr.msk.f32.vlgmr.msra.gmra.mrb[0].mxu0 %vm197_vm0, %v568_v29  ;;  %v282_v44 = vcombine.low %v177_v38, %v178_v39  ;;  %v664_v47 = vcombine.low %v1073_v41, %v1074_v42  ;;  %v1080_v48 = vld [vmem:[%s1474_s4 + $0x18] sm:$0xf]  ;;  %v375_v51 = vcombine.low %v1044_v45, %v1045_v46  ;;  %v1046_v58 = vld [vmem:[%s1474_s4 + $0x48] sm:$0xf]  ;;  %v1053_v1 = vld [vmem:[%s1474_s4 + $0xc] sm:$0xf] }
  0x1f   : > { %1225 = vmatpush3.bf16.msra.mxu1 %v1222_v12  ;;  %1241 = vmatpush3.bf16.msra.mxu0 %v1238_v13  ;;  %v1081_v49 = vld [vmem:[%s1474_s4 + $0x38] sm:$0xf]  ;;  %v1047_v59 = vld [vmem:[%s1474_s4 + $0x68] sm:$0xf]  ;;  %v1054_v2 = vld [vmem:[%s1474_s4 + $0x2c] sm:$0xf] }
  0x20   : > { %1159 = vmatprep.subr.mxu1 %v181_v21  ;;  %1195 = vmatprep.subr.mxu0 %v1077_v33  ;;  %v759_v55 = vcombine.low %v1080_v48, %v1081_v49  ;;  %v1082_v61 = vld [vmem:[%s1474_s4 + $0x58] sm:$0xf]  ;;  %v376_v0 = vcombine.low %v1046_v58, %v1047_v59  ;;  %v1089_v4 = vld [vmem:[%s1474_s4 + $0x1c] sm:$0xf]  ;;  %v471_v7 = vcombine.low %v1053_v1, %v1054_v2  ;;  %v1055_v10 = vld [vmem:[%s1474_s4 + $0x4c] sm:$0xf] }
  0x21   : > { %1161 = vmatprep.mubr.msk.f32.mxu1 %vm197_vm0, %v281_v34  ;;  %1197 = vmatprep.mubr.msk.f32.mxu0 %vm197_vm0, %v663_v35  ;;  %v1083_v62 = vld [vmem:[%s1474_s4 + $0x78] sm:$0xf]  ;;  %v1090_v5 = vld [vmem:[%s1474_s4 + $0x3c] sm:$0xf]  ;;  %v1056_v11 = vld [vmem:[%s1474_s4 + $0x6c] sm:$0xf] }
  0x22   : > { %v760_v3 = vcombine.low %v1082_v61, %v1083_v62  ;;  %v855_v9 = vcombine.low %v1089_v4, %v1090_v5  ;;  %v1091_v12 = vld [vmem:[%s1474_s4 + $0x5c] sm:$0xf]  ;;  %v472_v14 = vcombine.low %v1055_v10, %v1056_v11  ;;  %v1098_v18 = vld [vmem:[%s1621_s2] ss:$0 sm:$0xff]  ;;  %s963_s28 = sshll.u32 %s166_s27, 4  ;;  %s1571_s28 = int_to_ptr.vmem [resolvable:$true] %s963_s28 }
  0x23   : > { %1160 = vmatpush3.msra.mxu1 %v181_v21  ;;  %1196 = vmatpush3.msra.mxu0 %v1077_v33  ;;  %v1092_v13 = vld [vmem:[%s1474_s4 + $0x7c] sm:$0xf]  ;;  %s1305_s16 = scalar_lea.vmem %s1571_s28, 256  ;;  %p1312_p0 = scmp.lt.s32.totalorder %s1571_s28, %s1310_s9 }
  0x24   : > { %1227 = vmatprep.subr.bf16.mxu1 %v1226_v40  ;;  %1243 = vmatprep.subr.bf16.mxu0 %v1242_v43  ;;  %v856_v15 = vcombine.low %v1091_v12, %v1092_v13  ;;  %p1306_p11 = scmp.ne.s32.totalorder %s1571_s28, %s1305_s16  ;;  %p1313_p1 = scmp.lt.s32.totalorder %s1311_s10, %s1305_s16 }
  0x26   : > { %1162 = vmatmul.mubr.msk.f32.vlgmr.msra.gmra.mrb[0].mxu1 %vm197_vm0, %v282_v44  ;;  %1198 = vmatmul.mubr.msk.f32.vlgmr.msra.gmra.mrb[0].mxu0 %vm197_vm0, %v664_v47  ;;  %p1307_p12 = pnand %p1306_p11, %p1430_p5  ;;  %p1314_p2 = por %p1313_p1, %p1312_p0 }
  0x27   : > { %1229 = vmatpush3.bf16.msra.mxu1 %v1226_v40  ;;  %1245 = vmatpush3.bf16.msra.mxu0 %v1242_v43 }
  0x28   : > { %1168 = vmatprep.subr.mxu1 %v1050_v50  ;;  %1204 = vmatprep.subr.mxu0 %v1086_v54  ;;  %p1308_p13 = pneg %p1307_p12 }
  0x29   : > { %1170 = vmatprep.mubr.msk.f32.mxu1 %vm197_vm0, %v375_v51  ;;  %1206 = vmatprep.mubr.msk.f32.mxu0 %vm197_vm0, %v759_v55 }
  0x2a   : > { %p1315_p3 = pnand %p1314_p2, %p1308_p13 }
  0x2b   : > { %1169 = vmatpush3.msra.mxu1 %v1050_v50  ;;  %1205 = vmatpush3.msra.mxu0 %v1086_v54 }
  0x2c   : > { %1231 = vmatprep.subr.bf16.mxu1 %v1230_v60  ;;  %1247 = vmatprep.subr.bf16.mxu0 %v1246_v63 }
  0x2e   : > { %1171 = vmatmul.mubr.msk.f32.vlgmr.msra.gmra.mrb[0].mxu1 %vm197_vm0, %v376_v0  ;;  %1207 = vmatmul.mubr.msk.f32.vlgmr.msra.gmra.mrb[0].mxu0 %vm197_vm0, %v760_v3 }
  0x2f   : > { %1233 = vmatpush3.bf16.msra.mxu1 %v1230_v60  ;;  %1249 = vmatpush3.bf16.msra.mxu0 %v1246_v63 }
  0x30   : > { %1177 = vmatprep.subr.mxu1 %v1059_v6  ;;  %1213 = vmatprep.subr.mxu0 %v1095_v8 }
  0x31   : > { %1179 = vmatprep.mubr.msk.f32.mxu1 %vm197_vm0, %v471_v7  ;;  %1215 = vmatprep.mubr.msk.f32.mxu0 %vm197_vm0, %v855_v9 }
  0x33   : > { %1178 = vmatpush3.msra.mxu1 %v1059_v6  ;;  %1214 = vmatpush3.msra.mxu0 %v1095_v8 }
  0x36   : > { %1180 = vmatmul.mubr.msk.f32.vlgmr.msra.gmra.mrb[0].mxu1 %vm197_vm0, %v472_v14  ;;  %1216 = vmatmul.mubr.msk.f32.vlgmr.msra.gmra.mrb[0].mxu0 %vm197_vm0, %v856_v15 }
 0x109   : > { %v1181_v16 = vpop.f32.mrb[0].mxu1  ;;  %v1217_v17 = vpop.f32.mrb[0].mxu0 }
 0x10a   : > { %v543_v19 = vpop.f32.mrb[1].mxu1  ;;  %v1250_v20 = vadd.f32 %v1217_v17, %v1181_v16  ;;  %v927_v21 = vpop.f32.mrb[1].mxu0 }
 0x10b   : > { %v1251_v22 = vadd.f32 %v927_v21, %v543_v19 }
 0x10c   : > { %v946_v23 = vadd.f32 %v1250_v20, %v1098_v18 }
 0x10d   : > { %v945_v24 = vadd.f32 %v1251_v22, %v1098_v18 }
 0x10e   : > { %948 = vst [vmem:[%s166_s27 + $0x8] sm:$0xff] %v946_v23 }
 0x10f   : > { %947 = vst [vmem:[%s166_s27] sm:$0xff] %v945_v24 }
 0x110   : > { %1318 = shalt.err (!%p1315_p3)
}
 0x111   : > { %s1319_s11 = scalar_lea.hbm %s1576_s6, 256  ;;  %s1323_s20 = scalar_lea.hbm %s1622_s3, 512 }
 0x112   : > { %p1320_p4 = scmp.ne.s32.totalorder %s1576_s6, %s1319_s11  ;;  %p1324_p9 = scmp.lt.u32.totalorder %s1576_s6, %s1622_s3 }
 0x113   : > { %p1325_p10 = scmp.lt.u32.totalorder %s1323_s20, %s1319_s11  ;;  %p1327_p12 = scmp.lt.u32.totalorder %s1319_s11, %s1576_s6 }
 0x114   : > { %p1321_p7 = pnand %p1320_p4, %p1430_p5 }
 0x115   : > { %p1326_p11 = por %p1325_p10, %p1324_p9 }
 0x116   : > { %p1322_p8 = pneg %p1321_p7 }
 0x117   : > { %p1328_p13 = por %p1327_p12, %p1326_p11 }
 0x119   : > { %p1329_p0 = pnand %p1328_p13, %p1322_p8 }
 0x11b   : > { %1332 = shalt.err (!%p1329_p0)
}
 0x11c   : > { %s1370_s26 = smov 128   ;;  %s1371_s4 = smov 8  }
 0x11d   : > { %1264 = dma.vmem_to_hbm [thread:$0]  (%p1430_p5), %s1571_s28, 256, %s1576_s6, %s1578_s7, %s1370_s26, %s1370_s26, %s1371_s4  }
 0x11e PF: > { %p1270_p1 = scmp.ge.s32.totalorder %s1367_s15, 2  ;;  %s978_s27 = sand.u32 1, %s1355_s12  }
 0x11f   : > { %s979_s29 = scalar_lea.sflag [#allocation3], %s978_s27 }
 0x120   : > { %p1267_p2 = pnand %p1270_p1, %p1434_p6 }
 0x122   : > { %1350 = dma.done.wait (!%p1267_p2), %s979_s29, 256  }
 0x123   : > { %1352 = vsyncadd (!%p1267_p2), %s979_s29, 4294967040  ;;  %p13_p3 = scmp.ge.s32.totalorder %s1417_s18, 4   ;;  %s1625_s12 = smov %s1359_s13 }
 0x124   : > { %s1626_s13 = smov %s1363_s14  ;;  %s1627_s14 = smov %s1428_s21 }
 0x125   : > { %s1628_s15 = smov %s1417_s18  ;;  %15 = sbr.rel (!%p13_p3) target bundleno = 3 (0x3), region = 81 }
 0x12c   :  { %984 = vsyncpa [#allocation3], 1 }
 0x12d   :  { %986 = vsyncpa [#allocation3 + $0x1], 1 }

</bundles_post_ra>
